<compile_context>
chip_gen: v7x
topology: tpu7x:2x2x1
jax: 0.10.0
libtpu: 0.0.40
codegen_flags: <defaults>
</compile_context>

<pallas_src>
import functools

import jax
import jax.numpy as jnp
from jax.experimental import pallas as pl
from jax.experimental.pallas import tpu as pltpu

# Weight pattern from the PyTorch module:
#   for i in range(10): w[:, 31 + 64*i : 64 + 64*i] = weight
# i.e. column c is weighted iff c < 640 and (c % 64) >= 31.
_PATTERN_END = 64 * 10  # 640
_LANES = 128
_ROW_CAP = 256


def _vmem_capacity_bytes():
    """Physical VMEM per core; conservative fallback = smallest gen (v7x)."""
    try:
        return int(pltpu.get_tpu_info().vmem_capacity_bytes)
    except Exception:
        return 64 << 20


def _pick_row_tile(b, cap=_ROW_CAP):
    """Row tile: b itself if small, else the largest multiple-of-8 divisor."""
    if b <= cap:
        return b
    t = cap - (cap % 8)
    while t >= 8:
        if b % t == 0:
            return t
        t -= 8
    return 8  # unreachable once b is padded to a multiple of 8


def _pick_col_tile(dps, tb, itemsize, budget_bytes):
    """Largest 128-multiple column tile dividing dps within the VMEM budget.

    Budget covers 2 inputs x 2 pipeline buffers of one (tb, td) tile, using
    sublane-padded byte accounting (native tile is 32 bytes per column).
    """
    sub = max(1, 32 // itemsize)          # 8 for f32, 16 for bf16
    tb_pad = -(-tb // sub) * sub
    cap = budget_bytes // (4 * tb_pad * itemsize)
    cap = max(_LANES, (cap // _LANES) * _LANES)
    if dps <= cap:
        return dps
    t = cap
    while t >= _LANES:
        if dps % t == 0:
            return t
        t -= _LANES
    return _LANES  # dps is a multiple of 128, so this always divides


def _weighted_mse_kernel(x_ref, t_ref, o_ref, *, weight):
    """Slab-fused weighted squared-difference reduction for one (TB, TD) tile.

    x_ref, t_ref : (TB, TD) input tiles in VMEM (native dtype)
    o_ref        : (TB, 128) lane-dense per-row partial sums (f32), resident
                   across the D ("arbitrary") grid axis -> used as accumulator.
    """
    tb, td = x_ref.shape
    k = pl.program_id(2)
    # Global column origin of this tile: split-major, then D-tile index.
    col0 = (pl.program_id(0) * pl.num_programs(2) + k) * td

    @pl.when(k == 0)
    def _init():
        o_ref[...] = jnp.zeros_like(o_ref)

    # Compile-time per-lane mask: every slab origin is 128-aligned and the
    # pattern period (64) divides 128, so (global_col % 64) == (lane % 64).
    lane = jax.lax.broadcasted_iota(jnp.int32, (1, _LANES), 1)
    wmask = (lane % 64) >= 31
    wm1 = jnp.float32(weight - 1.0)

    acc = jnp.zeros((tb, _LANES), jnp.float32)
    for j in range(td // _LANES):
        xs = x_ref[:, j * _LANES:(j + 1) * _LANES].astype(jnp.float32)
        ts = t_ref[:, j * _LANES:(j + 1) * _LANES].astype(jnp.float32)
        diff = xs - ts
        d2 = diff * diff
        contrib = d2
        # Weighted correction only for slabs that can overlap [0, 640).
        # 640 is a multiple of 128, so a slab is either fully weighted-region
        # or fully outside it.
        if j * _LANES < _PATTERN_END:
            in_w = (col0 + j * _LANES) < _PATTERN_END  # traced scalar bool
            w_extra = jnp.where(jnp.logical_and(in_w, wmask),
                                wm1, jnp.float32(0.0))
            contrib = contrib + d2 * w_extra
        acc = acc + contrib

    o_ref[...] += acc


def custom_mse_loss(inp, target, *, weight=5.0, reduction="mean",
                    size_average=None):
    """JAX/Pallas equivalent of CustomMSELoss.forward (any input shape)."""
    b = inp.shape[0]
    x2 = inp.reshape(b, -1)
    t2 = target.reshape(b, -1)
    d = x2.shape[1]

    # Pad the feature dim to a multiple of 128 (lane-dense output, no
    # cross-lane reductions in-kernel).  Padded columns: diff == 0 -> 0.
    d_pad = (-d) % _LANES
    dp = d + d_pad

    # Pad batch to a multiple of 8 only when the divisor search would
    # otherwise fall back to TB=B (VMEM-OOM risk).  Padded rows contribute 0.
    b_pad_rows = (-b) % 8 if (b > _ROW_CAP and b % 8 != 0) else 0
    bp = b + b_pad_rows

    if d_pad or b_pad_rows:
        x2 = jnp.pad(x2, ((0, b_pad_rows), (0, d_pad)))
        t2 = jnp.pad(t2, ((0, b_pad_rows), (0, d_pad)))

    tb = _pick_row_tile(bp)
    row_tiles = bp // tb

    # v7x megacore: guarantee >= 2 programs on the parallel axes.  If the row
    # axis is degenerate, split D into two halves on a leading parallel axis.
    splits = 2 if (row_tiles < 2 and dp % (2 * _LANES) == 0) else 1
    dps = dp // splits

    itemsize = jnp.dtype(x2.dtype).itemsize
    phys_vmem = _vmem_capacity_bytes()
    input_budget = min(24 << 20, phys_vmem // 3)
    td = _pick_col_tile(dps, tb, itemsize, input_budget)
    kps = dps // td
    grid = (splits, row_tiles, kps)

    # Explicit scoped-VMEM limit (v5e default is only 16 MiB).
    sub = max(1, 32 // itemsize)
    tb_sl = -(-tb // sub) * sub
    input_bytes = 4 * tb_sl * td * itemsize       # 2 inputs x 2 buffers
    out_bytes = 2 * max(tb, 8) * _LANES * 4
    vmem_limit = int(min(phys_vmem - (4 << 20),
                         max(16 << 20, input_bytes + out_bytes + (8 << 20))))

    cost = pl.CostEstimate(
        flops=4 * bp * dp,
        transcendentals=0,
        bytes_accessed=2 * bp * dp * itemsize + splits * bp * _LANES * 4,
    )

    partial = pl.pallas_call(
        functools.partial(_weighted_mse_kernel, weight=float(weight)),
        out_shape=jax.ShapeDtypeStruct((splits, bp, _LANES), jnp.float32),
        grid_spec=pltpu.PrefetchScalarGridSpec(
            num_scalar_prefetch=0,
            grid=grid,
            in_specs=[
                pl.BlockSpec((tb, td), lambda s, i, k: (i, s * kps + k)),
                pl.BlockSpec((tb, td), lambda s, i, k: (i, s * kps + k)),
            ],
            out_specs=pl.BlockSpec((None, tb, _LANES),
                                   lambda s, i, k: (s, i, 0)),
        ),
        compiler_params=pltpu.CompilerParams(
            dimension_semantics=("parallel", "parallel", "arbitrary"),
            vmem_limit_bytes=vmem_limit,
        ),
        cost_estimate=cost,
    )(x2, t2)

    # Cheap epilogue in plain JAX: sum the D-split halves and the 128 lanes,
    # drop padded rows, divide by the ORIGINAL feature count.
    loss = jnp.sum(partial, axis=(0, 2))[:b] / jnp.float32(d)  # shape (B,)

    if reduction == "none":
        return loss
    elif reduction == "mean" and size_average:
        return jnp.mean(loss)
    elif reduction == "mean":
        return jnp.mean(loss, axis=0)  # loss.mean(dim=0) on 1-D -> scalar
    elif reduction == "sum":
        return jnp.sum(loss)
    # PyTorch module implicitly returns None for other reductions.
    return None


def _reference(inp, target, weight=5.0):
    """Pure-JAX reference mirroring the PyTorch forward (reduction='mean')."""
    b = inp.shape[0]
    x2 = inp.reshape(b, -1).astype(jnp.float32)
    t2 = target.reshape(b, -1).astype(jnp.float32)
    d = x2.shape[1]
    w = jnp.ones((b, d), jnp.float32)
    for i in range(10):
        w = w.at[:, 31 + 64 * i:64 + 64 * i].set(weight)
    diff = (x2 - t2) ** 2
    loss = jnp.sum(w * diff, axis=1) / d
    return jnp.mean(loss, axis=0)


if __name__ == "__main__":
    key = jax.random.PRNGKey(0)
    k1, k2 = jax.random.split(key)
    # NCHW feature map: (B=2, C=4, H=16, W=16) -> D=1024 (covers all 10
    # weighted 64-channel groups of the pattern).
    x = jax.random.normal(k1, (2, 4, 16, 16), dtype=jnp.float32)
    y = jax.random.normal(k2, (2, 4, 16, 16), dtype=jnp.float32)

    out = custom_mse_loss(x, y, weight=5.0, reduction="mean", size_average=None)
    out = jax.block_until_ready(out)

    ref = jax.block_until_ready(_reference(x, y, weight=5.0))
    assert jnp.allclose(out, ref, rtol=1e-5, atol=1e-5), (out, ref)

    print("KERNEL_OK")
</pallas_src>

<mosaic_0001>
module attributes {stable_mosaic.version = 11 : i64} {
  func.func @_weighted_mse_kernel(%arg0: i32, %arg1: i32, %arg2: i32, %arg3: memref<2x512xf32, #tpu.memory_space<vmem>>, %arg4: memref<2x512xf32, #tpu.memory_space<vmem>>, %arg5: memref<1x2x128xf32, #tpu.memory_space<vmem>>) attributes {dimension_semantics = [#tpu.dimension_semantics<parallel>, #tpu.dimension_semantics<parallel>, #tpu.dimension_semantics<arbitrary>], iteration_bounds = array<i64: 2, 1, 1>, scalar_prefetch = 0 : i64, scratch_operands = 0 : i64, tpu.core_type = #tpu.core_type<tc>, window_params = [{transform_indices = @transform_0, window_bounds = array<i64: 2, 512>}, {transform_indices = @transform_1, window_bounds = array<i64: 2, 512>}, {transform_indices = @transform_2, window_bounds = array<i64: 1, 2, 128>}]} {
    %c1_i32 = arith.constant 1 : i32
    %0 = arith.muli %arg0, %c1_i32 : i32
    %1 = arith.addi %0, %arg2 : i32
    %c512_i32 = arith.constant 512 : i32
    %2 = arith.muli %1, %c512_i32 : i32
    %c0_i32 = arith.constant 0 : i32
    %3 = arith.cmpi eq, %arg2, %c0_i32 : i32
    %4 = arith.extui %3 : i1 to i32
    %c0_i32_0 = arith.constant 0 : i32
    %5 = arith.cmpi ne, %4, %c0_i32_0 : i32
    scf.if %5 {
      %cst_36 = arith.constant 0.000000e+00 : f32
      %92 = vector.broadcast %cst_36 : f32 to vector<2x128xf32>
      %c0_37 = arith.constant 0 : index
      %c0_38 = arith.constant 0 : index
      %c0_39 = arith.constant 0 : index
      %93 = vector.load %arg5[%c0_37, %c0_38, %c0_39] : memref<1x2x128xf32, #tpu.memory_space<vmem>>, vector<1x2x128xf32>
      %94 = vector.shape_cast %93 : vector<1x2x128xf32> to vector<2x128xf32>
      %95 = vector.shape_cast %92 : vector<2x128xf32> to vector<1x2x128xf32>
      tpu.vector_store %arg5[%c0_37, %c0_38, %c0_39], %95 {strides = array<i32>} : memref<1x2x128xf32, #tpu.memory_space<vmem>>, vector<1x2x128xf32>,
    } else {
    }
    %6 = tpu.iota {dimensions = array<i32: 1>} : vector<1x128xi32>
    %c64_i32 = arith.constant 64 : i32
    %c0_i32_1 = arith.constant 0 : i32
    %7 = arith.cmpi eq, %c64_i32, %c0_i32_1 : i32
    %c1_i32_2 = arith.constant 1 : i32
    %8 = arith.select %7, %c1_i32_2, %c64_i32 : i32
    %9 = vector.broadcast %8 : i32 to vector<1x128xi32>
    %10 = arith.remsi %6, %9 : vector<1x128xi32>
    %c0_i32_3 = arith.constant 0 : i32
    %11 = vector.broadcast %c0_i32_3 : i32 to vector<1x128xi32>
    %12 = arith.cmpi ne, %10, %11 : vector<1x128xi32>
    %c0_i32_4 = arith.constant 0 : i32
    %13 = vector.broadcast %c0_i32_4 : i32 to vector<1x128xi32>
    %14 = arith.cmpi slt, %10, %13 : vector<1x128xi32>
    %c0_i32_5 = arith.constant 0 : i32
    %15 = arith.cmpi slt, %8, %c0_i32_5 : i32
    %16 = vector.broadcast %15 : i1 to vector<1x128xi1>
    %17 = vector.broadcast %16 : vector<1x128xi1> to vector<1x128xi1>
    %18 = arith.xori %14, %17 : vector<1x128xi1>
    %19 = arith.andi %18, %12 : vector<1x128xi1>
    %20 = vector.broadcast %8 : i32 to vector<1x128xi32>
    %21 = arith.addi %10, %20 : vector<1x128xi32>
    %22 = arith.select %19, %21, %10 : vector<1x128xi1>, vector<1x128xi32>
    %c31_i32 = arith.constant 31 : i32
    %23 = vector.broadcast %c31_i32 : i32 to vector<1x128xi32>
    %24 = arith.cmpi sge, %22, %23 : vector<1x128xi32>
    %cst = arith.constant 0.000000e+00 : f32
    %25 = vector.broadcast %cst : f32 to vector<2x128xf32>
    %c0 = arith.constant 0 : index
    %c0_6 = arith.constant 0 : index
    %26 = vector.load %arg3[%c0, %c0_6] : memref<2x512xf32, #tpu.memory_space<vmem>>, vector<2x128xf32>
    %c0_7 = arith.constant 0 : index
    %c0_8 = arith.constant 0 : index
    %27 = vector.load %arg4[%c0_7, %c0_8] : memref<2x512xf32, #tpu.memory_space<vmem>>, vector<2x128xf32>
    %28 = arith.subf %26, %27 : vector<2x128xf32>
    %29 = arith.mulf %28, %28 : vector<2x128xf32>
    %c0_i32_9 = arith.constant 0 : i32
    %30 = arith.addi %2, %c0_i32_9 : i32
    %c640_i32 = arith.constant 640 : i32
    %31 = arith.cmpi slt, %30, %c640_i32 : i32
    %32 = vector.broadcast %31 : i1 to vector<1x128xi1>
    %33 = arith.andi %32, %24 : vector<1x128xi1>
    %cst_10 = arith.constant 4.000000e+00 : f32
    %cst_11 = arith.constant 0.000000e+00 : f32
    %34 = vector.broadcast %cst_10 : f32 to vector<1x128xf32>
    %35 = vector.broadcast %cst_11 : f32 to vector<1x128xf32>
    %36 = arith.select %33, %34, %35 : vector<1x128xi1>, vector<1x128xf32>
    %37 = vector.broadcast %36 : vector<1x128xf32> to vector<2x128xf32>
    %38 = arith.mulf %29, %37 : vector<2x128xf32>
    %39 = arith.addf %29, %38 : vector<2x128xf32>
    %40 = arith.addf %25, %39 : vector<2x128xf32>
    %c0_12 = arith.constant 0 : index
    %c128 = arith.constant 128 : index
    %41 = vector.load %arg3[%c0_12, %c128] : memref<2x512xf32, #tpu.memory_space<vmem>>, vector<2x128xf32>
    %c0_13 = arith.constant 0 : index
    %c128_14 = arith.constant 128 : index
    %42 = vector.load %arg4[%c0_13, %c128_14] : memref<2x512xf32, #tpu.memory_space<vmem>>, vector<2x128xf32>
    %43 = arith.subf %41, %42 : vector<2x128xf32>
    %44 = arith.mulf %43, %43 : vector<2x128xf32>
    %c128_i32 = arith.constant 128 : i32
    %45 = arith.addi %2, %c128_i32 : i32
    %c640_i32_15 = arith.constant 640 : i32
    %46 = arith.cmpi slt, %45, %c640_i32_15 : i32
    %47 = vector.broadcast %46 : i1 to vector<1x128xi1>
    %48 = arith.andi %47, %24 : vector<1x128xi1>
    %cst_16 = arith.constant 4.000000e+00 : f32
    %cst_17 = arith.constant 0.000000e+00 : f32
    %49 = vector.broadcast %cst_16 : f32 to vector<1x128xf32>
    %50 = vector.broadcast %cst_17 : f32 to vector<1x128xf32>
    %51 = arith.select %48, %49, %50 : vector<1x128xi1>, vector<1x128xf32>
    %52 = vector.broadcast %51 : vector<1x128xf32> to vector<2x128xf32>
    %53 = arith.mulf %44, %52 : vector<2x128xf32>
    %54 = arith.addf %44, %53 : vector<2x128xf32>
    %55 = arith.addf %40, %54 : vector<2x128xf32>
    %c0_18 = arith.constant 0 : index
    %c256 = arith.constant 256 : index
    %56 = vector.load %arg3[%c0_18, %c256] : memref<2x512xf32, #tpu.memory_space<vmem>>, vector<2x128xf32>
    %c0_19 = arith.constant 0 : index
    %c256_20 = arith.constant 256 : index
    %57 = vector.load %arg4[%c0_19, %c256_20] : memref<2x512xf32, #tpu.memory_space<vmem>>, vector<2x128xf32>
    %58 = arith.subf %56, %57 : vector<2x128xf32>
    %59 = arith.mulf %58, %58 : vector<2x128xf32>
    %c256_i32 = arith.constant 256 : i32
    %60 = arith.addi %2, %c256_i32 : i32
    %c640_i32_21 = arith.constant 640 : i32
    %61 = arith.cmpi slt, %60, %c640_i32_21 : i32
    %62 = vector.broadcast %61 : i1 to vector<1x128xi1>
    %63 = arith.andi %62, %24 : vector<1x128xi1>
    %cst_22 = arith.constant 4.000000e+00 : f32
    %cst_23 = arith.constant 0.000000e+00 : f32
    %64 = vector.broadcast %cst_22 : f32 to vector<1x128xf32>
    %65 = vector.broadcast %cst_23 : f32 to vector<1x128xf32>
    %66 = arith.select %63, %64, %65 : vector<1x128xi1>, vector<1x128xf32>
    %67 = vector.broadcast %66 : vector<1x128xf32> to vector<2x128xf32>
    %68 = arith.mulf %59, %67 : vector<2x128xf32>
    %69 = arith.addf %59, %68 : vector<2x128xf32>
    %70 = arith.addf %55, %69 : vector<2x128xf32>
    %c0_24 = arith.constant 0 : index
    %c384 = arith.constant 384 : index
    %71 = vector.load %arg3[%c0_24, %c384] : memref<2x512xf32, #tpu.memory_space<vmem>>, vector<2x128xf32>
    %c0_25 = arith.constant 0 : index
    %c384_26 = arith.constant 384 : index
    %72 = vector.load %arg4[%c0_25, %c384_26] : memref<2x512xf32, #tpu.memory_space<vmem>>, vector<2x128xf32>
    %73 = arith.subf %71, %72 : vector<2x128xf32>
    %74 = arith.mulf %73, %73 : vector<2x128xf32>
    %c384_i32 = arith.constant 384 : i32
    %75 = arith.addi %2, %c384_i32 : i32
    %c640_i32_27 = arith.constant 640 : i32
    %76 = arith.cmpi slt, %75, %c640_i32_27 : i32
    %77 = vector.broadcast %76 : i1 to vector<1x128xi1>
    %78 = arith.andi %77, %24 : vector<1x128xi1>
    %cst_28 = arith.constant 4.000000e+00 : f32
    %cst_29 = arith.constant 0.000000e+00 : f32
    %79 = vector.broadcast %cst_28 : f32 to vector<1x128xf32>
    %80 = vector.broadcast %cst_29 : f32 to vector<1x128xf32>
    %81 = arith.select %78, %79, %80 : vector<1x128xi1>, vector<1x128xf32>
    %82 = vector.broadcast %81 : vector<1x128xf32> to vector<2x128xf32>
    %83 = arith.mulf %74, %82 : vector<2x128xf32>
    %84 = arith.addf %74, %83 : vector<2x128xf32>
    %85 = arith.addf %70, %84 : vector<2x128xf32>
    %c0_30 = arith.constant 0 : index
    %c0_31 = arith.constant 0 : index
    %c0_32 = arith.constant 0 : index
    %86 = vector.load %arg5[%c0_30, %c0_31, %c0_32] : memref<1x2x128xf32, #tpu.memory_space<vmem>>, vector<1x2x128xf32>
    %87 = vector.shape_cast %86 : vector<1x2x128xf32> to vector<2x128xf32>
    %88 = arith.addf %87, %85 : vector<2x128xf32>
    %c0_33 = arith.constant 0 : index
    %c0_34 = arith.constant 0 : index
    %c0_35 = arith.constant 0 : index
    %89 = vector.load %arg5[%c0_33, %c0_34, %c0_35] : memref<1x2x128xf32, #tpu.memory_space<vmem>>, vector<1x2x128xf32>
    %90 = vector.shape_cast %89 : vector<1x2x128xf32> to vector<2x128xf32>
    %91 = vector.shape_cast %88 : vector<2x128xf32> to vector<1x2x128xf32>
    tpu.vector_store %arg5[%c0_33, %c0_34, %c0_35], %91 {strides = array<i32>} : memref<1x2x128xf32, #tpu.memory_space<vmem>>, vector<1x2x128xf32>,
    return
  }
  func.func @transform_0(%arg0: i32, %arg1: i32, %arg2: i32) -> (i32, i32) {
    %c1_i32 = arith.constant 1 : i32
    %0 = arith.muli %arg0, %c1_i32 : i32
    %1 = arith.addi %0, %arg2 : i32
    %c0_i32 = arith.constant 0 : i32
    return %arg1, %1 : i32, i32
  }
  func.func @transform_1(%arg0: i32, %arg1: i32, %arg2: i32) -> (i32, i32) {
    %c1_i32 = arith.constant 1 : i32
    %0 = arith.muli %arg0, %c1_i32 : i32
    %1 = arith.addi %0, %arg2 : i32
    %c0_i32 = arith.constant 0 : i32
    return %arg1, %1 : i32, i32
  }
  func.func @transform_2(%arg0: i32, %arg1: i32, %arg2: i32) -> (i32, i32, i32) {
    %c0_i32 = arith.constant 0 : i32
    %c0_i32_0 = arith.constant 0 : i32
    return %arg0, %arg1, %c0_i32 : i32, i32, i32
  }
}

</mosaic_0001>

<bundles_post_ra>
// kernel: tpu_custom_call.1
= control target key start
LH: loop header
LB: loop body
LE: loop exit
PB: predicated region body
PF: predicated region fallthrough
CT: control target
= control target key end

     0   :  { %7 = vsyncpa [#allocation3], 0  ;;  %s971_s0 = inlined_call_operand.hbm [shape: f32[2,1024], index: 0, kind: input, shape index: {}]   ;;  %s972_s1 = inlined_call_operand.hbm [shape: f32[2,1024], index: 1, kind: input, shape index: {}]   ;;  %s973_s2 = inlined_call_operand.hbm [shape: f32[2,2,128], index: 2, kind: output, shape index: {}]  }
   0x1   :  { %9 = vsyncpa [#allocation3 + $0x1], 0 }
   0x2   :  { %10 = vsyncpa [#allocation6], 0 }
   0x3   :  { %12 = vsyncpa [#allocation6 + $0x1], 0 }
   0x4   :  { %13 = vsyncpa [#allocation4], 0 }
   0x5   :  { %15 = vsyncpa [#allocation4 + $0x1], 0  ;;  %s701_s9 = smov 0   ;;  %s703_s10 = smov 0  }
   0x6   :  { %s705_s11 = smov 0   ;;  %s707_s12 = smov 0  }
   0x7   :  { %s709_s13 = smov 0   ;;  %s711_s14 = smov 0  }
   0x8 LB: > { %s445_s15 = sadd.s32 4294967295, %s680_s14   ;;  %s446_s16 = sadd.s32 4294967294, %s680_s14   ;;  %s680_s14 = sphi %s711_s14, %s21_s14   ;;  %s676_s13 = sphi %s709_s13, %s998_s13   ;;  %s672_s12 = sphi %s707_s12, %s997_s12   ;;  %s668_s11 = sphi %s705_s11, %s996_s11   ;;  %s664_s10 = sphi %s703_s10, %s995_s10   ;;  %s660_s9 = sphi %s701_s9, %s994_s9  }
   0x9   : > { %s40_s17 = sadd.s32 1, %s676_s13  ;;  %s51_s18 = sadd.s32 1, %s668_s11 }
   0xa   : > { %p42_p0 = scmp.ge.s32.totalorder %s40_s17, 2  ;;  %p58_p1 = scmp.ne.s32.totalorder %s668_s11, %s664_s10 }
   0xb   : > { %p59_p2 = scmp.eq.s32.totalorder %s680_s14, 0  ;;  %p64_p3 = scmp.ne.s32.totalorder %s664_s10, %s660_s9 }
   0xc   : > { %s1000_s17 = smov (%p42_p0, %s40_s17), 0  ;;  %p65_p5 = scmp.eq.s32.totalorder %s445_s15, 0 }
   0xd   : > { %p742_p4 = por %p59_p2, %p58_p1  ;;  %s47_s20 = ssub.s32 %s676_s13, %s1000_s17 }
   0xe   : > { %p120_p6 = scmp.eq.s32.totalorder %s445_s15, 1  ;;  %p49_p7 = scmp.eq.s32.totalorder %s47_s20, 0 }
   0xf   : > { %p748_p8 = por %p65_p5, %p64_p3  ;;  %p126_p10 = scmp.eq.s32.totalorder %s446_s16, 1 }
  0x10   : > { %p752_p9 = por %p120_p6, %p58_p1  ;;  %p483_p13 = scmp.lt.s32.totalorder %s680_s14, 2 }
  0x11   : > { %s977_s21 = scalar_select %p748_p8, 1, 0 }
  0x12   : > { %s978_s22 = scalar_select %p752_p9, 1, 0 }
  0x13   : > { %s757_s23 = scalar_select %p49_p7, %s668_s11, %s51_s18  }
  0x14   : > { %p759_p11 = por %p126_p10, %p64_p3  ;;  %s766_s25 = sand.u32 1, %s668_s11  }
  0x15   : > { %s449_s26 = sshll.u32 %s766_s25, 3  ;;  %s464_s27 = sshll.u32 %s676_s13, 7 }
  0x16   : > { %s979_s24 = scalar_select %p759_p11, 1, 0 }
  0x17   : > { %s775_s30 = scalar_lea.hbm %s971_s0, %s464_s27  ;;  %s150_s3 = scalar_lea.vmem [#allocation2], %s449_s26 }
  0x18   : > { %s161_s4 = sshll.u32 %s150_s3, 4  ;;  %p783_p0 = pnand %p483_p13, %p742_p4  ;;  %s779_s4 = int_to_ptr.vmem [resolvable:$true] %s161_s4 }
  0x19   : > { %s147_s6 = scalar_lea.sflag [#allocation3], %s766_s25  ;;  %s534_s7 = scalar_lea.hbm %s775_s30, 128 }
  0x1a   : > { %p535_p3 = scmp.ne.s32.totalorder %s775_s30, %s534_s7  ;;  %p536_p5 = pneg %p783_p0 }
  0x1b   : > { %s539_s16 = scalar_lea.hbm %s971_s0, 256  ;;  %p540_p4 = scmp.lt.u32.totalorder %s775_s30, %s971_s0 }
  0x1c   : > { %p537_p6 = pnand %p536_p5, %p535_p3  ;;  %p541_p10 = scmp.lt.u32.totalorder %s539_s16, %s534_s7 }
  0x1d   : > { %p543_p12 = scmp.lt.u32.totalorder %s534_s7, %s775_s30 }
  0x1e   : > { %p538_p7 = pneg %p537_p6  ;;  %p542_p13 = por %p541_p10, %p540_p4 }
  0x20   : > { %p544_p1 = por %p543_p12, %p542_p13 }
  0x22   : > { %p545_p2 = pnand %p544_p1, %p538_p7 }
  0x24   : > { %548 = shalt.err (!%p545_p2)
}
  0x25   : > { %s549_s20 = scalar_lea.vmem %s779_s4, 128  ;;  %s682_s28 = smov [#allocation2]  }
  0x26   : > { %p550_p3 = scmp.ne.s32.totalorder %s779_s4, %s549_s20  ;;  %s554_s29 = sshll.u32 %s682_s28, 4  ;;  %s555_s29 = int_to_ptr.vmem [resolvable:$false] %s554_s29 }
  0x27   : > { %s556_s3 = scalar_lea.vmem %s555_s29, 256  ;;  %p557_p9 = scmp.lt.s32.totalorder %s779_s4, %s555_s29 }
  0x28   : > { %p552_p6 = pnand %p550_p3, %p536_p5  ;;  %p558_p4 = scmp.lt.s32.totalorder %s556_s3, %s549_s20 }
  0x2a   : > { %p553_p11 = pneg %p552_p6  ;;  %p559_p10 = por %p558_p4, %p557_p9 }
  0x2c   : > { %p560_p12 = pnand %p559_p10, %p553_p11 }
  0x2e   : > { %563 = shalt.err (!%p560_p12)
}
  0x2f   : > { %475 = dma.hbm_to_vmem [thread:$0]  (!%p783_p0), %s775_s30, 128, %s779_s4, %s147_s6  }
  0x30   : > { %p981_p1 = scmp.lt.s32.totalorder %s680_s14, 3  ;;  %p982_p2 = scmp.ge.s32.totalorder %s680_s14, 1 }
  0x31   : > { %s828_s16 = scalar_lea.hbm %s972_s1, %s464_s27  ;;  %s172_s18 = scalar_lea.vmem [#allocation5], %s449_s26 }
  0x32   : > { %p819_p7 = pnand %p982_p2, %p981_p1  ;;  %s183_s19 = sshll.u32 %s172_s18, 4  ;;  %s184_s19 = int_to_ptr.vmem [resolvable:$true] %s183_s19 }
  0x33   : > { %s169_s30 = scalar_lea.sflag [#allocation6], %s766_s25  ;;  %s564_s4 = scalar_lea.hbm %s828_s16, 128 }
  0x34   : > { %s983_s7 = scalar_select %p819_p7, 1, 0 }
  0x35   : > { %p565_p9 = scmp.ne.s32.totalorder %s828_s16, %s564_s4  ;;  %s569_s27 = scalar_lea.hbm %s972_s1, 256 }
  0x36   : > { %p570_p3 = scmp.lt.u32.totalorder %s828_s16, %s972_s1  ;;  %p571_p6 = scmp.lt.u32.totalorder %s569_s27, %s564_s4 }
  0x37   : > { %p567_p11 = pnand %p565_p9, %p536_p5  ;;  %p573_p10 = scmp.lt.u32.totalorder %s564_s4, %s828_s16 }
  0x38   : > { %p572_p4 = por %p571_p6, %p570_p3 }
  0x39   : > { %p568_p13 = pneg %p567_p11 }
  0x3a   : > { %p574_p12 = por %p573_p10, %p572_p4 }
  0x3c   : > { %p575_p1 = pnand %p574_p12, %p568_p13 }
  0x3e   : > { %578 = shalt.err (!%p575_p1)
}
  0x3f   : > { %s579_s25 = scalar_lea.vmem %s184_s19, 128  ;;  %s683_s26 = smov [#allocation5]  }
  0x40   : > { %p580_p2 = scmp.ne.s32.totalorder %s184_s19, %s579_s25  ;;  %s584_s3 = sshll.u32 %s683_s26, 4  ;;  %s585_s3 = int_to_ptr.vmem [resolvable:$false] %s584_s3 }
  0x41   : > { %s586_s8 = scalar_lea.vmem %s585_s3, 256  ;;  %p587_p8 = scmp.lt.s32.totalorder %s184_s19, %s585_s3 }
  0x42   : > { %p582_p9 = pnand %p580_p2, %p536_p5  ;;  %p588_p7 = scmp.lt.s32.totalorder %s586_s8, %s579_s25 }
  0x44   : > { %p583_p11 = pneg %p582_p9  ;;  %p589_p3 = por %p588_p7, %p587_p8 }
  0x46   : > { %p590_p6 = pnand %p589_p3, %p583_p11 }
  0x48   : > { %593 = shalt.err (!%p590_p6)
}
  0x49   : > { %478 = dma.hbm_to_vmem [thread:$0]  (!%p783_p0), %s828_s16, 128, %s184_s19, %s169_s30  }
  0x4a   : > { %p984_p13 = scmp.ne.s32.totalorder %s983_s7, 0 }
  0x4b   : > { %s855_s15 = sand.u32 (!%p984_p13), 1, %s664_s10   ;;  %p985_p8 = scmp.ne.s32.totalorder (!%p984_p13), %s977_s21, 0 }
  0x4c   : > { %192 = sbr.rel (%p984_p13) target bundleno = 124 (0x7c), region = 28  ;;  %s456_s18 = sshll.u32 (!%p984_p13), %s855_s15, 3 }
  0x4d   : > { %s195_s4 = scalar_lea.sflag (!%p984_p13), [#allocation3], %s855_s15  ;;  %s859_s6 = scalar_lea.vmem (!%p984_p13), [#allocation2], %s456_s18 }
  0x53   : > { %647 = dma.done.wait (%p985_p8), %s195_s4, 128  }
  0x54   : > { %649 = vsyncadd (%p985_p8), %s195_s4, 4294967168  ;;  %s204_s5 = scalar_lea.sflag [#allocation6], %s855_s15  ;;  %s866_s7 = scalar_lea.vmem [#allocation5], %s456_s18 }
  0x55   : > { %651 = dma.done.wait (%p985_p8), %s204_s5, 128  }
  0x56   : > { %653 = vsyncadd (%p985_p8), %s204_s5, 4294967168  ;;  %s458_s16 = sshll.u32 %s855_s15, 1  ;;  %s459_s19 = sshll.u32 %s672_s12, 9  ;;  %v244_v0 = vlaneseq  ;;  %v684_v1 = vmov 0.0   ;;  %v259_v6 = vld [vmem:[%s859_s6] sm:$0x3] }
  0x57   : > { %p263_p0 = scmp.lt.s32.totalorder %s459_s19, 640  ;;  %s874_s30 = scalar_lea.vmem [#allocation7], %s458_s16  ;;  %v260_v7 = vld [vmem:[%s866_s7] sm:$0x3]  ;;  %v272_v9 = vld [vmem:[%s859_s6 + $0x2] sm:$0x3] }
  0x58   : > { %243 = vst [vmem:[%s874_s30] sm:$0x3] %v684_v1  ;;  %v245_v2 = vand.u32 127, %v244_v0  ;;  %s276_s20 = sadd.s32 128, %s459_s19  ;;  %s290_s27 = sadd.s32 256, %s459_s19  ;;  %v261_v8 = vsub.f32 %v259_v6, %v260_v7  ;;  %v273_v10 = vld [vmem:[%s866_s7 + $0x2] sm:$0x3] }
  0x59   : > { %s264_s21 = scalar_select %p263_p0, 1, 0  ;;  %v274_v13 = vsub.f32 %v272_v9, %v273_v10  ;;  %v286_v14 = vld [vmem:[%s859_s6 + $0x4] sm:$0x3]  ;;  %v287_v15 = vld [vmem:[%s866_s7 + $0x4] sm:$0x3] }
  0x5a   : > { %v250_v3 = vand.u32 63, %v245_v2  ;;  %p877_p5 = scmp.lt.s32.totalorder %s276_s20, 640  ;;  %p881_p7 = scmp.lt.s32.totalorder %s290_s27, 640  ;;  %v262_v17 = vmul.f32 %v261_v8, %v261_v8  ;;  %v288_v18 = vsub.f32 %v286_v14, %v287_v15  ;;  %v300_v19 = vld [vmem:[%s859_s6 + $0x6] sm:$0x3] }
  0x5b   : > { %v265_v4 = vstv %s264_s21  ;;  %s304_s25 = sadd.s32 384, %s459_s19  ;;  %v275_v20 = vmul.f32 %v274_v13, %v274_v13  ;;  %v301_v22 = vld [vmem:[%s866_s7 + $0x6] sm:$0x3]  ;;  %s461_s4 = sshll.u32 %s672_s12, 5 }
  0x5c   : > { %vm885_vm0 = vcmp.ge.s32.totalorder %v250_v3, 31  ;;  %vm266_vm1 = vcmp.eq.s32.totalorder %v265_v4, 1  ;;  %s278_s26 = scalar_select %p877_p5, 1, 0  ;;  %v289_v24 = vmul.f32 %v288_v18, %v288_v18  ;;  %v302_v28 = vsub.f32 %v300_v19, %v301_v22 }
  0x5d   : > { %vm267_vm2 = vmand %vm266_vm1, %vm885_vm0  ;;  %s292_s3 = scalar_select %p881_p7, 1, 0 }
  0x5e   : > { %v279_v11 = vstv %s278_s26  ;;  %p899_p4 = scmp.lt.s32.totalorder %s304_s25, 640  ;;  %v268_v12 = vsel %vm267_vm2, 4.0, %v684_v1  ;;  %v303_v33 = vmul.f32 %v302_v28, %v302_v28  ;;  %s332_s6 = sshll.u32 %s874_s30, 4  ;;  %s923_s6 = int_to_ptr.vmem [resolvable:$true] %s332_s6 }
  0x5f   : > { %vm280_vm3 = vcmp.eq.s32.totalorder %v279_v11, 1  ;;  %v293_v16 = vstv %s292_s3  ;;  %v269_v23 = vmul.f32 %v268_v12, %v262_v17  ;;  %v314_v39 = vld [vmem:[%s874_s30] sm:$0x3]  ;;  %s921_s16 = scalar_lea.hbm %s973_s2, %s461_s4  ;;  %s318_s19 = scalar_lea.sflag [#allocation4], %s855_s15 }
  0x60   : > { %vm281_vm4 = vmand %vm280_vm3, %vm885_vm0  ;;  %vm294_vm5 = vcmp.eq.s32.totalorder %v293_v16, 1  ;;  %s306_s18 = scalar_select %p899_p4, 1, 0 }
  0x61   : > { %v282_v21 = vsel %vm281_vm4, 4.0, %v684_v1  ;;  %vm295_vm6 = vmand %vm294_vm5, %vm885_vm0  ;;  %v270_v30 = vadd.f32 %v269_v23, %v262_v17  ;;  %s594_s20 = scalar_lea.vmem %s923_s6, 32  ;;  %p991_p12 = scmp.ne.s32.totalorder %s978_s22, 0 }
  0x62   : > { %v296_v25 = vsel %vm295_vm6, 4.0, %v684_v1  ;;  %v307_v26 = vstv %s306_s18  ;;  %v283_v27 = vmul.f32 %v282_v21, %v275_v20  ;;  %p595_p10 = scmp.ne.s32.totalorder %s923_s6, %s594_s20  ;;  %s685_s12 = smov [#allocation7]  }
  0x63   : > { %vm308_vm7 = vcmp.eq.s32.totalorder %v307_v26, 1  ;;  %v297_v29 = vmul.f32 %v296_v25, %v289_v24  ;;  %s598_s27 = sshll.u32 %s685_s12, 4  ;;  %s599_s27 = int_to_ptr.vmem [resolvable:$false] %s598_s27 }
  0x64   : > { %vm309_vm8 = vmand %vm308_vm7, %vm885_vm0  ;;  %v284_v32 = vadd.f32 %v283_v27, %v275_v20  ;;  %p596_p1 = pnand %p595_p10, %p991_p12  ;;  %s600_s21 = scalar_lea.vmem %s599_s27, 64 }
  0x65   : > { %v310_v31 = vsel %vm309_vm8, 4.0, %v684_v1  ;;  %v298_v34 = vadd.f32 %v297_v29, %v289_v24  ;;  %p601_p9 = scmp.lt.s32.totalorder %s923_s6, %s599_s27  ;;  %p602_p11 = scmp.lt.s32.totalorder %s600_s21, %s594_s20 }
  0x66   : > { %v285_v35 = vadd.f32 %v284_v32, %v270_v30  ;;  %v311_v36 = vmul.f32 %v310_v31, %v303_v33  ;;  %p597_p2 = pneg %p596_p1 }
  0x67   : > { %p603_p3 = por %p602_p11, %p601_p9 }
  0x68   : > { %v299_v37 = vadd.f32 %v298_v34, %v285_v35  ;;  %v312_v38 = vadd.f32 %v311_v36, %v303_v33 }
  0x69   : > { %p604_p6 = pnand %p603_p3, %p597_p2 }
  0x6a   : > { %v313_v40 = vadd.f32 %v312_v38, %v299_v37 }
  0x6c   : > { %v315_v41 = vadd.f32 %v314_v39, %v313_v40 }
  0x6e   : > { %316 = vst [vmem:[%s874_s30] sm:$0x3] %v315_v41 }
  0x6f   : > { %607 = shalt.err (!%p604_p6)
}
  0x70   : > { %s608_s15 = scalar_lea.hbm %s921_s16, 32  ;;  %s612_s29 = scalar_lea.hbm %s973_s2, 64 }
  0x71   : > { %p609_p13 = scmp.ne.s32.totalorder %s921_s16, %s608_s15  ;;  %p613_p5 = scmp.lt.u32.totalorder %s921_s16, %s973_s2 }
  0x72   : > { %p614_p7 = scmp.lt.u32.totalorder %s612_s29, %s608_s15  ;;  %p616_p10 = scmp.lt.u32.totalorder %s608_s15, %s921_s16 }
  0x73   : > { %p610_p8 = pnand %p609_p13, %p991_p12 }
  0x74   : > { %p615_p4 = por %p614_p7, %p613_p5 }
  0x75   : > { %p611_p0 = pneg %p610_p8 }
  0x76   : > { %p617_p1 = por %p616_p10, %p615_p4 }
  0x78   : > { %p618_p2 = pnand %p617_p1, %p611_p0 }
  0x7a   : > { %621 = shalt.err (!%p618_p2)
}
  0x7b   : > { %470 = dma.vmem_to_hbm [thread:$0]  (%p991_p12), %s923_s6, 32, %s921_s16, %s318_s19  }
  0x7c PF: > { %s344_s3 = sand.u32 1, %s660_s9   ;;  %p992_p9 = scmp.ne.s32.totalorder %s979_s24, 0 }
  0x7d   : > { %p993_p11 = scmp.ge.s32.totalorder %s680_s14, 2  ;;  %s345_s8 = scalar_lea.sflag [#allocation4], %s344_s3 }
  0x7f   : > { %p480_p3 = pnand %p993_p11, %p992_p9 }
  0x81   : > { %655 = dma.done.wait (!%p480_p3), %s345_s8, 32  }
  0x82   : > { %657 = vsyncadd (!%p480_p3), %s345_s8, 4294967264  ;;  %s21_s14 = sadd.s32 1, %s680_s14   ;;  %s994_s9 = smov %s664_s10 }
  0x83   : > { %p18_p6 = scmp.ge.s32.totalorder %s21_s14, 4   ;;  %s995_s10 = smov %s668_s11 }
  0x84   : > { %s996_s11 = smov %s757_s23  ;;  %s997_s12 = smov %s676_s13 }
  0x85   : > { %s998_s13 = smov %s1000_s17  ;;  %20 = sbr.rel (!%p18_p6) target bundleno = 8 (0x8), region = 90 }
  0x8c   :  { %350 = vsyncpa [#allocation3], 1 }
  0x8d   :  { %352 = vsyncpa [#allocation3 + $0x1], 1 }
  0x8e   :  { %353 = vsyncpa [#allocation6], 1 }
  0x8f   :  { %355 = vsyncpa [#allocation6 + $0x1], 1 }
  0x90   :  { %356 = vsyncpa [#allocation4], 1 }
  0x91   :  { %358 = vsyncpa [#allocation4 + $0x1], 1 }

</bundles_post_ra>
